<compile_context>
chip_gen: v5e
topology: v5e:2x2
jax: 0.10.0
libtpu: 0.0.40
codegen_flags: <defaults>
</compile_context>

<pallas_src>
import functools

import jax
import jax.numpy as jnp
from jax import lax
from jax.experimental import pallas as pl
from jax.experimental.pallas import tpu as pltpu


def _round_up(x, m):
    return ((x + m - 1) // m) * m


def _vmem_limit_bytes():
    """Raise scoped VMEM above the 16/32 MiB default, but stay inside the
    chip's physical capacity (v7x has only 64 MiB per TensorCore)."""
    try:
        cap = pltpu.get_tpu_info().vmem_capacity_bytes
        return min(int(cap * 3 // 4), 96 * 1024 * 1024)
    except Exception:  # query unavailable -> keep compiler defaults
        return None


# --------- stage 1: conv-as-matmul (K-tiled, bf16 x bf16 -> f32) + BN stats --
def _conv_stats_kernel(p_ref, w_ref, y_ref, sum_ref, sq_ref, acc_ref):
    i = pl.program_id(1)            # N-tile index within this core's slice
    k = pl.program_id(2)            # K-tile (reduction) index

    @pl.when(k == 0)
    def _():
        acc_ref[...] = jnp.zeros_like(acc_ref)

    acc_ref[...] += jnp.dot(p_ref[...], w_ref[...],
                            preferred_element_type=jnp.float32)

    @pl.when(k == pl.num_programs(2) - 1)
    def _():
        y = acc_ref[...]
        y_ref[...] = y.astype(y_ref.dtype)

        @pl.when(i == 0)
        def _():
            sum_ref[...] = jnp.zeros_like(sum_ref)
            sq_ref[...] = jnp.zeros_like(sq_ref)

        sum_ref[...] += jnp.sum(y, axis=0, keepdims=True).reshape(sum_ref.shape)
        sq_ref[...] += jnp.sum(y * y, axis=0, keepdims=True).reshape(sq_ref.shape)


# --------- stage 2: precomputed per-channel affine + LeakyReLU ---------------
def _bn_lrelu_kernel(y_ref, scale_ref, shift_ref, o_ref, *, slope):
    z = y_ref[...] * scale_ref[...] + shift_ref[...]
    o_ref[...] = jnp.where(z > 0, z, slope * z).astype(o_ref.dtype)


def down_forward(x_nchw, conv_w, bn_gamma, bn_beta, *, eps=1e-5, slope=0.2,
                 tile_n=512, n_split=2, channels_last=False):
    """Forward of `Down`. x_nchw: [B, Cin, H, W] -> [B, Cout, H/2, W/2]."""
    B, Cin, H, W = x_nchw.shape
    Cout = conv_w.shape[0]
    Ho, Wo = H // 2, W // 2
    N = B * Ho * Wo
    K = 16 * Cin

    # ---- glue: NCHW -> NHWC (bf16), im2col (kernel=4, stride=2, pad=1) ----
    # TODO(synk): for production sizes, fuse the im2col into stage 1 (manual
    # DMA of padded input rows + in-VMEM patch assembly) to cut the ~4x
    # redundant HBM traffic of the materialized patch matrix.
    x = jnp.transpose(x_nchw, (0, 2, 3, 1)).astype(jnp.bfloat16)
    xp = jnp.pad(x, ((0, 0), (1, 1), (1, 1), (0, 0)))
    cols = []
    for kh in range(4):
        for kw in range(4):
            cols.append(xp[:, kh:kh + 2 * Ho:2, kw:kw + 2 * Wo:2, :])  # [B,Ho,Wo,Cin]
    patches = jnp.concatenate(cols, axis=-1).reshape(N, K)            # [(kh,kw,cin)]

    # PyTorch conv weight [Cout, Cin, kh, kw] -> [(kh, kw, cin), Cout], bf16.
    wmat = jnp.transpose(conv_w, (2, 3, 1, 0)).reshape(K, Cout).astype(jnp.bfloat16)

    # ---- tiling ----
    tile_n = max(128, min(tile_n, _round_up(N, 128)))        # multiple of 128
    n_tiles = _round_up(pl.cdiv(N, tile_n), n_split)
    N_pad = n_tiles * tile_n
    tiles_per_core = n_tiles // n_split
    if N_pad > N:
        # zero rows: zero matmul output -> zero contribution to sum/sumsq
        patches = jnp.pad(patches, ((0, N_pad - N), (0, 0)))

    if K <= 2048:
        tk = K
    elif K % 2048 == 0:
        tk = 2048
    else:
        tk = K  # TODO(synk): pick a K divisor for unusual Cin at very large K
    k_tiles = K // tk

    vmem_limit = _vmem_limit_bytes()

    # ---- stage 1: conv matmul + per-core per-channel sum / sumsq ----
    y, ch_sum, ch_sq = pl.pallas_call(
        _conv_stats_kernel,
        out_shape=(
            jax.ShapeDtypeStruct((N_pad, Cout), jnp.float32),
            jax.ShapeDtypeStruct((n_split, 1, Cout), jnp.float32),
            jax.ShapeDtypeStruct((n_split, 1, Cout), jnp.float32),
        ),
        grid_spec=pltpu.PrefetchScalarGridSpec(
            num_scalar_prefetch=0,
            grid=(n_split, tiles_per_core, k_tiles),
            in_specs=[
                pl.BlockSpec((tile_n, tk),
                             lambda c, i, k: (c * tiles_per_core + i, k)),
                pl.BlockSpec((tk, Cout), lambda c, i, k: (k, 0)),
            ],
            out_specs=[
                pl.BlockSpec((tile_n, Cout),
                             lambda c, i, k: (c * tiles_per_core + i, 0)),
                pl.BlockSpec((1, 1, Cout), lambda c, i, k: (c, 0, 0)),
                pl.BlockSpec((1, 1, Cout), lambda c, i, k: (c, 0, 0)),
            ],
            scratch_shapes=[pltpu.VMEM((tile_n, Cout), jnp.float32)],
        ),
        compiler_params=pltpu.CompilerParams(
            dimension_semantics=("parallel", "arbitrary", "arbitrary"),
            vmem_limit_bytes=vmem_limit),
    )(patches, wmat)

    # ---- tiny Cout-sized op: combine core partials, build scale/shift ----
    cnt = jnp.float32(N)                                    # true element count
    g = bn_gamma.astype(jnp.float32)
    b = bn_beta.astype(jnp.float32)
    mean = jnp.sum(ch_sum, axis=(0, 1)) / cnt
    var = jnp.maximum(jnp.sum(ch_sq, axis=(0, 1)) / cnt - mean * mean, 0.0)
    inv = lax.rsqrt(var + eps)
    scale = (g * inv).reshape(1, Cout)
    shift = (b - mean * g * inv).reshape(1, Cout)

    # ---- stage 2: fused per-channel affine + LeakyReLU ----
    out_flat = pl.pallas_call(
        functools.partial(_bn_lrelu_kernel, slope=slope),
        out_shape=jax.ShapeDtypeStruct((N_pad, Cout), jnp.float32),
        grid_spec=pltpu.PrefetchScalarGridSpec(
            num_scalar_prefetch=0,
            grid=(n_tiles,),
            in_specs=[
                pl.BlockSpec((tile_n, Cout), lambda i: (i, 0)),
                pl.BlockSpec((1, Cout), lambda i: (0, 0)),
                pl.BlockSpec((1, Cout), lambda i: (0, 0)),
            ],
            out_specs=pl.BlockSpec((tile_n, Cout), lambda i: (i, 0)),
        ),
        compiler_params=pltpu.CompilerParams(
            dimension_semantics=("parallel",),
            vmem_limit_bytes=vmem_limit),
    )(y, scale, shift)

    out_nhwc = out_flat[:N].reshape(B, Ho, Wo, Cout)
    if channels_last:
        return out_nhwc                       # consumer takes NHWC -> no transpose
    return jnp.transpose(out_nhwc, (0, 3, 1, 2))


# ---------------- references (for correctness checks) ------------------------
def _conv_bn_lrelu_ref(x_nchw, conv_w, bn_gamma, bn_beta, *, eps, slope,
                       cast_bf16):
    x = x_nchw.astype(jnp.bfloat16) if cast_bf16 else x_nchw.astype(jnp.float32)
    w = conv_w.astype(jnp.bfloat16) if cast_bf16 else conv_w.astype(jnp.float32)
    y = lax.conv_general_dilated(
        x, w, window_strides=(2, 2), padding=((1, 1), (1, 1)),
        dimension_numbers=("NCHW", "OIHW", "NCHW"),
        preferred_element_type=jnp.float32)
    mean = jnp.mean(y, axis=(0, 2, 3), keepdims=True)
    var = jnp.mean((y - mean) ** 2, axis=(0, 2, 3), keepdims=True)  # biased
    z = (y - mean) / jnp.sqrt(var + eps)
    z = z * bn_gamma.reshape(1, -1, 1, 1) + bn_beta.reshape(1, -1, 1, 1)
    return jnp.where(z > 0, z, slope * z)


if __name__ == "__main__":
    key = jax.random.PRNGKey(0)
    B, Cin, H, W = 2, 4, 16, 16
    Cout = 8

    kx, kw, kg = jax.random.split(key, 3)
    x = jax.random.normal(kx, (B, Cin, H, W), dtype=jnp.float32)

    # Conv2d weight: kaiming_normal_(a=0, mode='fan_in') => std = sqrt(2 / fan_in)
    fan_in = Cin * 4 * 4
    conv_w = jax.random.normal(kw, (Cout, Cin, 4, 4), dtype=jnp.float32) \
        * jnp.sqrt(2.0 / fan_in)

    # BatchNorm2d affine: weight ~ N(1.0, 0.02), bias = 0 (init_gain=0.02)
    bn_gamma = 1.0 + 0.02 * jax.random.normal(kg, (Cout,), dtype=jnp.float32)
    bn_beta = jnp.zeros((Cout,), dtype=jnp.float32)

    fwd = jax.jit(down_forward)
    out = jax.block_until_ready(fwd(x, conv_w, bn_gamma, bn_beta))
    assert out.shape == (B, Cout, H // 2, W // 2), out.shape

    # tight check vs a reference that feeds the MXU the same bf16 operands
    ref_bf16 = _conv_bn_lrelu_ref(x, conv_w, bn_gamma, bn_beta,
                                  eps=1e-5, slope=0.2, cast_bf16=True)
    err = float(jnp.max(jnp.abs(out - ref_bf16)))
    assert jnp.allclose(out, ref_bf16, rtol=1e-4, atol=1e-4), err

    # loose check vs the pure-f32 PyTorch-equivalent reference
    ref_f32 = _conv_bn_lrelu_ref(x, conv_w, bn_gamma, bn_beta,
                                 eps=1e-5, slope=0.2, cast_bf16=False)
    err32 = float(jnp.max(jnp.abs(out - ref_f32)))
    assert jnp.allclose(out, ref_f32, rtol=5e-2, atol=5e-2), err32

    print("KERNEL_OK")
</pallas_src>

<mosaic_0001>
module attributes {stable_mosaic.version = 11 : i64} {
  func.func @_conv_stats_kernel(%arg0: i32, %arg1: i32, %arg2: i32, %arg3: memref<128x64xbf16, #tpu.memory_space<vmem>>, %arg4: memref<64x8xbf16, #tpu.memory_space<vmem>>, %arg5: memref<128x8xf32, #tpu.memory_space<vmem>>, %arg6: memref<1x1x8xf32, #tpu.memory_space<vmem>>, %arg7: memref<1x1x8xf32, #tpu.memory_space<vmem>>, %arg8: memref<128x8xf32, #tpu.memory_space<vmem>>) attributes {dimension_semantics = [#tpu.dimension_semantics<parallel>, #tpu.dimension_semantics<arbitrary>, #tpu.dimension_semantics<arbitrary>], iteration_bounds = array<i64: 2, 1, 1>, scalar_prefetch = 0 : i64, scratch_operands = 1 : i64, tpu.core_type = #tpu.core_type<tc>, window_params = [{transform_indices = @transform_0, window_bounds = array<i64: 128, 64>}, {transform_indices = @transform_1, window_bounds = array<i64: 64, 8>}, {transform_indices = @transform_2, window_bounds = array<i64: 128, 8>}, {transform_indices = @transform_3, window_bounds = array<i64: 1, 1, 8>}, {transform_indices = @transform_4, window_bounds = array<i64: 1, 1, 8>}]} {
    %c0_i32 = arith.constant 0 : i32
    %0 = arith.cmpi eq, %arg2, %c0_i32 : i32
    %1 = arith.extui %0 : i1 to i32
    %c0_i32_0 = arith.constant 0 : i32
    %2 = arith.cmpi ne, %1, %c0_i32_0 : i32
    scf.if %2 {
      %cst_10 = arith.constant 0.000000e+00 : f32
      %12 = vector.broadcast %cst_10 : f32 to vector<128x8xf32>
      %c0_11 = arith.constant 0 : index
      %c0_12 = arith.constant 0 : index
      %13 = vector.load %arg8[%c0_11, %c0_12] : memref<128x8xf32, #tpu.memory_space<vmem>>, vector<128x8xf32>
      tpu.vector_store %arg8[%c0_11, %c0_12], %12 {strides = array<i32>} : memref<128x8xf32, #tpu.memory_space<vmem>>, vector<128x8xf32>,
    } else {
    }
    %c0 = arith.constant 0 : index
    %c0_1 = arith.constant 0 : index
    %3 = vector.load %arg8[%c0, %c0_1] : memref<128x8xf32, #tpu.memory_space<vmem>>, vector<128x8xf32>
    %c0_2 = arith.constant 0 : index
    %c0_3 = arith.constant 0 : index
    %4 = vector.load %arg3[%c0_2, %c0_3] : memref<128x64xbf16, #tpu.memory_space<vmem>>, vector<128x64xbf16>
    %c0_4 = arith.constant 0 : index
    %c0_5 = arith.constant 0 : index
    %5 = vector.load %arg4[%c0_4, %c0_5] : memref<64x8xbf16, #tpu.memory_space<vmem>>, vector<64x8xbf16>
    %cst = arith.constant dense<0.000000e+00> : vector<128x8xf32>
    %6 = tpu.matmul %4, %5, %cst {dimension_numbers = #tpu.dot_dimension_numbers<[1], [0], [0], [1], [0, 0, 1, 1], [], []>} : vector<128x64xbf16>, vector<64x8xbf16>, vector<128x8xf32> -> vector<128x8xf32>
    %7 = arith.addf %3, %6 : vector<128x8xf32>
    %c0_6 = arith.constant 0 : index
    %c0_7 = arith.constant 0 : index
    %8 = vector.load %arg8[%c0_6, %c0_7] : memref<128x8xf32, #tpu.memory_space<vmem>>, vector<128x8xf32>
    tpu.vector_store %arg8[%c0_6, %c0_7], %7 {strides = array<i32>} : memref<128x8xf32, #tpu.memory_space<vmem>>, vector<128x8xf32>,
    %c0_i32_8 = arith.constant 0 : i32
    %9 = arith.cmpi eq, %arg2, %c0_i32_8 : i32
    %10 = arith.extui %9 : i1 to i32
    %c0_i32_9 = arith.constant 0 : i32
    %11 = arith.cmpi ne, %10, %c0_i32_9 : i32
    scf.if %11 {
      %c0_10 = arith.constant 0 : index
      %c0_11 = arith.constant 0 : index
      %12 = vector.load %arg8[%c0_10, %c0_11] : memref<128x8xf32, #tpu.memory_space<vmem>>, vector<128x8xf32>
      %c0_12 = arith.constant 0 : index
      %c0_13 = arith.constant 0 : index
      %13 = vector.load %arg5[%c0_12, %c0_13] : memref<128x8xf32, #tpu.memory_space<vmem>>, vector<128x8xf32>
      tpu.vector_store %arg5[%c0_12, %c0_13], %12 {strides = array<i32>} : memref<128x8xf32, #tpu.memory_space<vmem>>, vector<128x8xf32>,
      %c0_i32_14 = arith.constant 0 : i32
      %14 = arith.cmpi eq, %arg1, %c0_i32_14 : i32
      %15 = arith.extui %14 : i1 to i32
      %c0_i32_15 = arith.constant 0 : i32
      %16 = arith.cmpi ne, %15, %c0_i32_15 : i32
      scf.if %16 {
        %cst_30 = arith.constant 0.000000e+00 : f32
        %30 = vector.broadcast %cst_30 : f32 to vector<1x1x8xf32>
        %c0_31 = arith.constant 0 : index
        %c0_32 = arith.constant 0 : index
        %c0_33 = arith.constant 0 : index
        %31 = vector.load %arg6[%c0_31, %c0_32, %c0_33] : memref<1x1x8xf32, #tpu.memory_space<vmem>>, vector<1x1x8xf32>
        tpu.vector_store %arg6[%c0_31, %c0_32, %c0_33], %30 {strides = array<i32>} : memref<1x1x8xf32, #tpu.memory_space<vmem>>, vector<1x1x8xf32>,
        %cst_34 = arith.constant 0.000000e+00 : f32
        %32 = vector.broadcast %cst_34 : f32 to vector<1x1x8xf32>
        %c0_35 = arith.constant 0 : index
        %c0_36 = arith.constant 0 : index
        %c0_37 = arith.constant 0 : index
        %33 = vector.load %arg7[%c0_35, %c0_36, %c0_37] : memref<1x1x8xf32, #tpu.memory_space<vmem>>, vector<1x1x8xf32>
        tpu.vector_store %arg7[%c0_35, %c0_36, %c0_37], %32 {strides = array<i32>} : memref<1x1x8xf32, #tpu.memory_space<vmem>>, vector<1x1x8xf32>,
      } else {
      }
      %c0_16 = arith.constant 0 : index
      %c0_17 = arith.constant 0 : index
      %c0_18 = arith.constant 0 : index
      %17 = vector.load %arg6[%c0_16, %c0_17, %c0_18] : memref<1x1x8xf32, #tpu.memory_space<vmem>>, vector<1x1x8xf32>
      %cst_19 = arith.constant dense<0.000000e+00> : vector<8xf32>
      %18 = vector.multi_reduction <add>, %12, %cst_19 [0] : vector<128x8xf32> to vector<8xf32>
      %19 = vector.shape_cast %18 : vector<8xf32> to vector<1x8xf32>
      %20 = vector.shape_cast %19 : vector<1x8xf32> to vector<1x1x8xf32>
      %21 = arith.addf %17, %20 : vector<1x1x8xf32>
      %c0_20 = arith.constant 0 : index
      %c0_21 = arith.constant 0 : index
      %c0_22 = arith.constant 0 : index
      %22 = vector.load %arg6[%c0_20, %c0_21, %c0_22] : memref<1x1x8xf32, #tpu.memory_space<vmem>>, vector<1x1x8xf32>
      tpu.vector_store %arg6[%c0_20, %c0_21, %c0_22], %21 {strides = array<i32>} : memref<1x1x8xf32, #tpu.memory_space<vmem>>, vector<1x1x8xf32>,
      %c0_23 = arith.constant 0 : index
      %c0_24 = arith.constant 0 : index
      %c0_25 = arith.constant 0 : index
      %23 = vector.load %arg7[%c0_23, %c0_24, %c0_25] : memref<1x1x8xf32, #tpu.memory_space<vmem>>, vector<1x1x8xf32>
      %24 = arith.mulf %12, %12 : vector<128x8xf32>
      %cst_26 = arith.constant dense<0.000000e+00> : vector<8xf32>
      %25 = vector.multi_reduction <add>, %24, %cst_26 [0] : vector<128x8xf32> to vector<8xf32>
      %26 = vector.shape_cast %25 : vector<8xf32> to vector<1x8xf32>
      %27 = vector.shape_cast %26 : vector<1x8xf32> to vector<1x1x8xf32>
      %28 = arith.addf %23, %27 : vector<1x1x8xf32>
      %c0_27 = arith.constant 0 : index
      %c0_28 = arith.constant 0 : index
      %c0_29 = arith.constant 0 : index
      %29 = vector.load %arg7[%c0_27, %c0_28, %c0_29] : memref<1x1x8xf32, #tpu.memory_space<vmem>>, vector<1x1x8xf32>
      tpu.vector_store %arg7[%c0_27, %c0_28, %c0_29], %28 {strides = array<i32>} : memref<1x1x8xf32, #tpu.memory_space<vmem>>, vector<1x1x8xf32>,
    } else {
    }
    return
  }
  func.func @transform_0(%arg0: i32, %arg1: i32, %arg2: i32) -> (i32, i32) {
    %c1_i32 = arith.constant 1 : i32
    %0 = arith.muli %arg0, %c1_i32 : i32
    %1 = arith.addi %0, %arg1 : i32
    %c0_i32 = arith.constant 0 : i32
    return %1, %arg2 : i32, i32
  }
  func.func @transform_1(%arg0: i32, %arg1: i32, %arg2: i32) -> (i32, i32) {
    %c0_i32 = arith.constant 0 : i32
    %c0_i32_0 = arith.constant 0 : i32
    return %arg2, %c0_i32 : i32, i32
  }
  func.func @transform_2(%arg0: i32, %arg1: i32, %arg2: i32) -> (i32, i32) {
    %c1_i32 = arith.constant 1 : i32
    %0 = arith.muli %arg0, %c1_i32 : i32
    %1 = arith.addi %0, %arg1 : i32
    %c0_i32 = arith.constant 0 : i32
    %c0_i32_0 = arith.constant 0 : i32
    return %1, %c0_i32 : i32, i32
  }
  func.func @transform_3(%arg0: i32, %arg1: i32, %arg2: i32) -> (i32, i32, i32) {
    %c0_i32 = arith.constant 0 : i32
    %c0_i32_0 = arith.constant 0 : i32
    %c0_i32_1 = arith.constant 0 : i32
    return %arg0, %c0_i32, %c0_i32_0 : i32, i32, i32
  }
  func.func @transform_4(%arg0: i32, %arg1: i32, %arg2: i32) -> (i32, i32, i32) {
    %c0_i32 = arith.constant 0 : i32
    %c0_i32_0 = arith.constant 0 : i32
    %c0_i32_1 = arith.constant 0 : i32
    return %arg0, %c0_i32, %c0_i32_0 : i32, i32, i32
  }
}

module attributes {stable_mosaic.version = 11 : i64} {
  func.func @_bn_lrelu_kernel(%arg0: i32, %arg1: memref<128x8xf32, #tpu.memory_space<vmem>>, %arg2: memref<1x8xf32, #tpu.memory_space<vmem>>, %arg3: memref<1x8xf32, #tpu.memory_space<vmem>>, %arg4: memref<128x8xf32, #tpu.memory_space<vmem>>) attributes {dimension_semantics = [#tpu.dimension_semantics<parallel>], iteration_bounds = array<i64: 2>, scalar_prefetch = 0 : i64, scratch_operands = 0 : i64, tpu.core_type = #tpu.core_type<tc>, window_params = [{transform_indices = @transform_0, window_bounds = array<i64: 128, 8>}, {pipeline_mode = #tpu.pipeline_mode<synchronous>, transform_indices = @transform_1, window_bounds = array<i64: 1, 8>}, {pipeline_mode = #tpu.pipeline_mode<synchronous>, transform_indices = @transform_2, window_bounds = array<i64: 1, 8>}, {transform_indices = @transform_3, window_bounds = array<i64: 128, 8>}]} {
    %c0 = arith.constant 0 : index
    %c0_0 = arith.constant 0 : index
    %0 = vector.load %arg1[%c0, %c0_0] : memref<128x8xf32, #tpu.memory_space<vmem>>, vector<128x8xf32>
    %c0_1 = arith.constant 0 : index
    %c0_2 = arith.constant 0 : index
    %1 = vector.load %arg2[%c0_1, %c0_2] : memref<1x8xf32, #tpu.memory_space<vmem>>, vector<1x8xf32>
    %2 = vector.broadcast %1 : vector<1x8xf32> to vector<128x8xf32>
    %3 = arith.mulf %0, %2 : vector<128x8xf32>
    %c0_3 = arith.constant 0 : index
    %c0_4 = arith.constant 0 : index
    %4 = vector.load %arg3[%c0_3, %c0_4] : memref<1x8xf32, #tpu.memory_space<vmem>>, vector<1x8xf32>
    %5 = vector.broadcast %4 : vector<1x8xf32> to vector<128x8xf32>
    %6 = arith.addf %3, %5 : vector<128x8xf32>
    %cst = arith.constant 0.000000e+00 : f32
    %7 = vector.broadcast %cst : f32 to vector<128x8xf32>
    %8 = arith.cmpf ogt, %6, %7 : vector<128x8xf32>
    %cst_5 = arith.constant 2.000000e-01 : f32
    %9 = vector.broadcast %cst_5 : f32 to vector<128x8xf32>
    %10 = arith.mulf %9, %6 : vector<128x8xf32>
    %11 = arith.select %8, %6, %10 : vector<128x8xi1>, vector<128x8xf32>
    %c0_6 = arith.constant 0 : index
    %c0_7 = arith.constant 0 : index
    %12 = vector.load %arg4[%c0_6, %c0_7] : memref<128x8xf32, #tpu.memory_space<vmem>>, vector<128x8xf32>
    tpu.vector_store %arg4[%c0_6, %c0_7], %11 {strides = array<i32>} : memref<128x8xf32, #tpu.memory_space<vmem>>, vector<128x8xf32>,
    return
  }
  func.func @transform_0(%arg0: i32) -> (i32, i32) {
    %c0_i32 = arith.constant 0 : i32
    %c0_i32_0 = arith.constant 0 : i32
    return %arg0, %c0_i32 : i32, i32
  }
  func.func @transform_1(%arg0: i32) -> (i32, i32) {
    %c0_i32 = arith.constant 0 : i32
    %c0_i32_0 = arith.constant 0 : i32
    %c0_i32_1 = arith.constant 0 : i32
    return %c0_i32, %c0_i32_0 : i32, i32
  }
  func.func @transform_2(%arg0: i32) -> (i32, i32) {
    %c0_i32 = arith.constant 0 : i32
    %c0_i32_0 = arith.constant 0 : i32
    %c0_i32_1 = arith.constant 0 : i32
    return %c0_i32, %c0_i32_0 : i32, i32
  }
  func.func @transform_3(%arg0: i32) -> (i32, i32) {
    %c0_i32 = arith.constant 0 : i32
    %c0_i32_0 = arith.constant 0 : i32
    return %arg0, %c0_i32 : i32, i32
  }
}

</mosaic_0001>

<bundles_post_ra>
// kernel: down_forward.3
= control target key start
LH: loop header
LB: loop body
LE: loop exit
PB: predicated region body
PF: predicated region fallthrough
CT: control target
= control target key end

     0   :  { %s400_s12 = smov 0   ;;  %s514_s0 = inlined_call_operand.vmem [shape: f32[256,8], index: 0, kind: input, shape index: {}]   ;;  %s515_s1 = inlined_call_operand.vmem [shape: f32[1,8], index: 1, kind: input, shape index: {}]   ;;  %s516_s2 = inlined_call_operand.vmem [shape: f32[1,8], index: 2, kind: input, shape index: {}]   ;;  %s517_s3 = inlined_call_operand.vmem [shape: f32[256,8], index: 3, kind: output, shape index: {}]  }
   0x1 LB: > { %s351_s13 = sadd.s32 4294967295, %s378_s12   ;;  %p355_p0 = scmp.ge.s32.totalorder %s378_s12, 1  ;;  %s378_s12 = sphi %s400_s12, %s13_s12  }
   0x2   : > { %p138_p1 = scmp.lt.s32.totalorder %s378_s12, 3 }
   0x4   : > { %p139_p2 = pnand %p355_p0, %p138_p1 }
   0x5   : > { %s356_s14 = sshll.u32 (!%p139_p2), %s351_s13, 4 }
   0x6   : > { %142 = sbr.rel (%p139_p2) target bundleno = 40 (0x28), region = 32  ;;  %p163_p3 = scmp.lt.s32.totalorder (!%p139_p2), %s356_s14, 31 }
   0xb   : > { %s519_s14 = smov (!%p163_p3, %s356_s14), 31  ;;  %v413_v0 = vld [vmem:[%s515_s1] ss:$0 sm:$0xff]  ;;  %vm278_vm0 = vcmask 64512  }
   0xc   : > { %s357_s17 = sshll.u32 %s519_s14, 3  ;;  %v424_v1 = vld [vmem:[%s516_s2] ss:$0 sm:$0xff] }
   0xd   : > { %s419_s20 = scalar_lea.vmem %s514_s0, %s357_s17  ;;  %s452_s25 = scalar_lea.vmem %s517_s3, %s357_s17 }
   0xe   : > { %v174_v2 = vld [vmem:[%s419_s20] sm:$0xff]  ;;  %v175_v3 = vld [vmem:[%s419_s20 + $0x8] sm:$0xff]  ;;  %v176_v4 = vld [vmem:[%s419_s20 + $0x10] sm:$0xff] }
   0xf   : > { %v194_v5 = vmul.f32 %v413_v0, %v174_v2  ;;  %v195_v6 = vmul.f32 %v413_v0, %v175_v3  ;;  %v196_v7 = vmul.f32 %v413_v0, %v176_v4  ;;  %v177_v8 = vld [vmem:[%s419_s20 + $0x18] sm:$0xff]  ;;  %v178_v9 = vld [vmem:[%s419_s20 + $0x20] sm:$0xff]  ;;  %v179_v10 = vld [vmem:[%s419_s20 + $0x28] sm:$0xff] }
  0x10   : > { %v197_v11 = vmul.f32 %v413_v0, %v177_v8  ;;  %v198_v12 = vmul.f32 %v413_v0, %v178_v9  ;;  %v199_v13 = vmul.f32 %v413_v0, %v179_v10  ;;  %v180_v14 = vld [vmem:[%s419_s20 + $0x30] sm:$0xff]  ;;  %v181_v15 = vld [vmem:[%s419_s20 + $0x38] sm:$0xff]  ;;  %v182_v24 = vld [vmem:[%s419_s20 + $0x40] sm:$0xff] }
  0x11   : > { %v214_v16 = vadd.f32 %v424_v1, %v194_v5  ;;  %v215_v17 = vadd.f32 %v424_v1, %v195_v6  ;;  %v216_v18 = vadd.f32 %v424_v1, %v196_v7  ;;  %v200_v19 = vmul.f32 %v413_v0, %v180_v14  ;;  %v183_v32 = vld [vmem:[%s419_s20 + $0x48] sm:$0xff]  ;;  %v184_v33 = vld [vmem:[%s419_s20 + $0x50] sm:$0xff]  ;;  %v185_v34 = vld [vmem:[%s419_s20 + $0x58] sm:$0xff] }
  0x12   : > { %v217_v20 = vadd.f32 %v424_v1, %v197_v11  ;;  %v218_v21 = vadd.f32 %v424_v1, %v198_v12  ;;  %v219_v22 = vadd.f32 %v424_v1, %v199_v13  ;;  %v201_v23 = vmul.f32 %v413_v0, %v181_v15  ;;  %v186_v46 = vld [vmem:[%s419_s20 + $0x60] sm:$0xff]  ;;  %v187_v56 = vld [vmem:[%s419_s20 + $0x68] sm:$0xff]  ;;  %v188_v57 = vld [vmem:[%s419_s20 + $0x70] sm:$0xff] }
  0x13   : > { %vm230_vm1 = vcmp.gt.f32.partialorder %v214_v16, 0.0  ;;  %v246_v25 = vmul.f32 0.2, %v214_v16  ;;  %vm231_vm2 = vcmp.gt.f32.partialorder %v215_v17, 0.0  ;;  %v247_v26 = vmul.f32 0.2, %v215_v17 }
  0x14   : > { %vm232_vm3 = vcmp.gt.f32.partialorder %v216_v18, 0.0  ;;  %v248_v27 = vmul.f32 0.2, %v216_v18  ;;  %vm233_vm4 = vcmp.gt.f32.partialorder %v217_v20, 0.0  ;;  %v249_v28 = vmul.f32 0.2, %v217_v20 }
  0x15   : > { %v262_v29 = vsel %vm230_vm1, %v214_v16, %v246_v25  ;;  %v263_v30 = vsel %vm231_vm2, %v215_v17, %v247_v26  ;;  %vm234_vm5 = vcmp.gt.f32.partialorder %v218_v21, 0.0  ;;  %v250_v31 = vmul.f32 0.2, %v218_v21  ;;  %v189_v60 = vld [vmem:[%s419_s20 + $0x78] sm:$0xff] }
  0x16   : > { %279 = vst.msk [vmem:[%s452_s25] sm:$0xff] %vm278_vm0, %v262_v29  ;;  %v264_v35 = vsel %vm232_vm3, %v216_v18, %v248_v27  ;;  %v265_v36 = vsel %vm233_vm4, %v217_v20, %v249_v28  ;;  %vm235_vm6 = vcmp.gt.f32.partialorder %v219_v22, 0.0  ;;  %v251_v37 = vmul.f32 0.2, %v219_v22 }
  0x17   : > { %280 = vst.msk [vmem:[%s452_s25 + $0x8] sm:$0xff] %vm278_vm0, %v263_v30  ;;  %v266_v38 = vsel %vm234_vm5, %v218_v21, %v250_v31  ;;  %v220_v39 = vadd.f32 %v424_v1, %v200_v19  ;;  %v221_v40 = vadd.f32 %v424_v1, %v201_v23  ;;  %v202_v41 = vmul.f32 %v413_v0, %v182_v24 }
  0x18   : > { %281 = vst.msk [vmem:[%s452_s25 + $0x10] sm:$0xff] %vm278_vm0, %v264_v35  ;;  %v267_v42 = vsel %vm235_vm6, %v219_v22, %v251_v37  ;;  %v203_v43 = vmul.f32 %v413_v0, %v183_v32  ;;  %v204_v44 = vmul.f32 %v413_v0, %v184_v33  ;;  %v205_v45 = vmul.f32 %v413_v0, %v185_v34 }
  0x19   : > { %282 = vst.msk [vmem:[%s452_s25 + $0x18] sm:$0xff] %vm278_vm0, %v265_v36  ;;  %vm236_vm7 = vcmp.gt.f32.partialorder %v220_v39, 0.0  ;;  %v252_v47 = vmul.f32 0.2, %v220_v39  ;;  %vm237_vm8 = vcmp.gt.f32.partialorder %v221_v40, 0.0  ;;  %v222_v48 = vadd.f32 %v424_v1, %v202_v41 }
  0x1a   : > { %283 = vst.msk [vmem:[%s452_s25 + $0x20] sm:$0xff] %vm278_vm0, %v266_v38  ;;  %v253_v49 = vmul.f32 0.2, %v221_v40  ;;  %v223_v50 = vadd.f32 %v424_v1, %v203_v43  ;;  %v224_v51 = vadd.f32 %v424_v1, %v204_v44  ;;  %v225_v52 = vadd.f32 %v424_v1, %v205_v45 }
  0x1b   : > { %284 = vst.msk [vmem:[%s452_s25 + $0x28] sm:$0xff] %vm278_vm0, %v267_v42  ;;  %v268_v53 = vsel %vm236_vm7, %v220_v39, %v252_v47  ;;  %vm238_vm9 = vcmp.gt.f32.partialorder %v222_v48, 0.0  ;;  %v254_v54 = vmul.f32 0.2, %v222_v48  ;;  %v206_v55 = vmul.f32 %v413_v0, %v186_v46 }
  0x1c   : > { %285 = vst.msk [vmem:[%s452_s25 + $0x30] sm:$0xff] %vm278_vm0, %v268_v53  ;;  %v269_v58 = vsel %vm237_vm8, %v221_v40, %v253_v49  ;;  %vm239_vm10 = vcmp.gt.f32.partialorder %v223_v50, 0.0  ;;  %v255_v59 = vmul.f32 0.2, %v223_v50  ;;  %vm240_vm11 = vcmp.gt.f32.partialorder %v224_v51, 0.0 }
  0x1d   : > { %286 = vst.msk [vmem:[%s452_s25 + $0x38] sm:$0xff] %vm278_vm0, %v269_v58  ;;  %v270_v61 = vsel %vm238_vm9, %v222_v48, %v254_v54  ;;  %v256_v62 = vmul.f32 0.2, %v224_v51  ;;  %vm241_vm12 = vcmp.gt.f32.partialorder %v225_v52, 0.0  ;;  %v257_v63 = vmul.f32 0.2, %v225_v52 }
  0x1e   : > { %287 = vst.msk [vmem:[%s452_s25 + $0x40] sm:$0xff] %vm278_vm0, %v270_v61  ;;  %v271_v2 = vsel %vm239_vm10, %v223_v50, %v255_v59  ;;  %v226_v3 = vadd.f32 %v424_v1, %v206_v55  ;;  %v207_v4 = vmul.f32 %v413_v0, %v187_v56  ;;  %v208_v5 = vmul.f32 %v413_v0, %v188_v57 }
  0x1f   : > { %288 = vst.msk [vmem:[%s452_s25 + $0x48] sm:$0xff] %vm278_vm0, %v271_v2  ;;  %v272_v6 = vsel %vm240_vm11, %v224_v51, %v256_v62  ;;  %v273_v7 = vsel %vm241_vm12, %v225_v52, %v257_v63  ;;  %v209_v8 = vmul.f32 %v413_v0, %v189_v60 }
  0x20   : > { %289 = vst.msk [vmem:[%s452_s25 + $0x50] sm:$0xff] %vm278_vm0, %v272_v6  ;;  %vm242_vm13 = vcmp.gt.f32.partialorder %v226_v3, 0.0  ;;  %v258_v9 = vmul.f32 0.2, %v226_v3  ;;  %v227_v10 = vadd.f32 %v424_v1, %v207_v4  ;;  %v228_v11 = vadd.f32 %v424_v1, %v208_v5 }
  0x21   : > { %290 = vst.msk [vmem:[%s452_s25 + $0x58] sm:$0xff] %vm278_vm0, %v273_v7  ;;  %v229_v12 = vadd.f32 %v424_v1, %v209_v8 }
  0x22   : > { %v274_v13 = vsel %vm242_vm13, %v226_v3, %v258_v9  ;;  %vm243_vm14 = vcmp.gt.f32.partialorder %v227_v10, 0.0  ;;  %v259_v14 = vmul.f32 0.2, %v227_v10  ;;  %vm244_vm15 = vcmp.gt.f32.partialorder %v228_v11, 0.0 }
  0x23   : > { %291 = vst.msk [vmem:[%s452_s25 + $0x60] sm:$0xff] %vm278_vm0, %v274_v13  ;;  %v260_v0 = vmul.f32 0.2, %v228_v11  ;;  %vm245_vm1 = vcmp.gt.f32.partialorder %v229_v12, 0.0  ;;  %v261_v15 = vmul.f32 0.2, %v229_v12 }
  0x24   : > { %v275_v16 = vsel %vm243_vm14, %v227_v10, %v259_v14 }
  0x25   : > { %292 = vst.msk [vmem:[%s452_s25 + $0x68] sm:$0xff] %vm278_vm0, %v275_v16  ;;  %v276_v17 = vsel %vm244_vm15, %v228_v11, %v260_v0  ;;  %v277_v18 = vsel %vm245_vm1, %v229_v12, %v261_v15 }
  0x26   : > { %293 = vst.msk [vmem:[%s452_s25 + $0x70] sm:$0xff] %vm278_vm0, %v276_v17 }
  0x27   : > { %294 = vst.msk [vmem:[%s452_s25 + $0x78] sm:$0xff] %vm278_vm0, %v277_v18 }
  0x28 PF: > { %s13_s12 = sadd.s32 1, %s378_s12  }
  0x29   : > { %p10_p4 = scmp.ge.s32.totalorder %s13_s12, 4  }
  0x2b   :  { %12 = sbr.rel (!%p10_p4) target bundleno = 1 (0x1), region = 62 }

// kernel: down_forward.2
= control target key start
LH: loop header
LB: loop body
LE: loop exit
PB: predicated region body
PF: predicated region fallthrough
CT: control target
= control target key end

     0   :  { %s960_s15 = smov 0   ;;  %s962_s16 = smov 0   ;;  %s1202_s0 = inlined_call_operand.vmem [shape: bf16[256,64], index: 0, kind: input, shape index: {}]   ;;  %s1203_s1 = inlined_call_operand.vmem [shape: bf16[64,8], index: 1, kind: input, shape index: {}]   ;;  %s1204_s2 = inlined_call_operand.vmem [shape: f32[256,8], index: 2, kind: output, shape index: {0}]   ;;  %s1205_s3 = inlined_call_operand.vmem [shape: f32[2,1,8], index: 3, kind: output, shape index: {1}]   ;;  %s1206_s4 = inlined_call_operand.vmem [shape: f32[2,1,8], index: 4, kind: output, shape index: {2}]  }
   0x1   :  { %s964_s17 = smov 0  }
   0x2 LB: > { %s34_s18 = sadd.s32 1, %s928_s16  ;;  %p798_p0 = scmp.ge.s32.totalorder %s932_s17, 1  ;;  %s932_s17 = sphi %s964_s17, %s15_s17   ;;  %s928_s16 = sphi %s962_s16, %s1208_s16   ;;  %s924_s15 = sphi %s960_s15, %s1207_s15  }
   0x3   : > { %p36_p1 = scmp.ge.s32.totalorder %s34_s18, 2  ;;  %p209_p2 = scmp.lt.s32.totalorder %s932_s17, 3 }
   0x5   : > { %s1210_s18 = smov (%p36_p1, %s34_s18), 0  ;;  %p210_p3 = pnand %p798_p0, %p209_p2 }
   0x6   : > { %s799_s21 = sshll.u32 (!%p210_p3), %s924_s15, 4  ;;  %p276_p5 = scmp.lt.s32.totalorder (!%p210_p3), %s924_s15, 1 }
   0x7   : > { %213 = sbr.rel (%p210_p3) target bundleno = 234 (0xea), region = 28  ;;  %p253_p4 = scmp.lt.s32.totalorder (!%p210_p3), %s799_s21, 31 }
   0xc   : > { %v872_v0 = vld [vmem:[%s1203_s1 + $0x18] sm:$0xff]  ;;  %v871_v1 = vld [vmem:[%s1203_s1 + $0x10] sm:$0xff]  ;;  %vm287_vm0 = vcmask 64512   ;;  %s1212_s21 = smov (!%p253_p4, %s799_s21), 31  ;;  %v934_v2 = vmov 0.0   ;;  %v870_v3 = vld [vmem:[%s1203_s1 + $0x8] sm:$0xff] }
   0xd   : > { %437 = vmatpush.bf16.msra.mxu0 %v872_v0  ;;  %873 = vmatpush.bf16.msra.mxu1 %v872_v0  ;;  %288 = vst.msk [vmem:[#allocation2] sm:$0xff] %vm287_vm0, %v934_v2  ;;  %s800_s26 = sshll.u32 %s1212_s21, 2  ;;  %v869_v4 = vld [vmem:[%s1203_s1] sm:$0xff]  ;;  %vm408_vm1 = vcmask 523264   ;;  %s802_s6 = sshll.u32 %s1212_s21, 3  ;;  %vm554_vm2 = vcmask 57344  }
   0xe   : > { %874 = vmatpush.bf16.msra.mxu2 %v872_v0  ;;  %875 = vmatpush.bf16.msra.mxu3 %v872_v0  ;;  %289 = vst.msk [vmem:[#allocation2 + $0x8] sm:$0xff] %vm287_vm0, %v934_v2  ;;  %s259_s5 = scalar_lea.vmem %s1202_s0, %s800_s26  ;;  %s1045_s9 = scalar_lea.vmem %s1204_s2, %s802_s6 }
   0xf   : > { %290 = vst.msk [vmem:[#allocation2 + $0x10] sm:$0xff] %vm287_vm0, %v934_v2  ;;  %v861_v5 = vld [vmem:[%s259_s5] sm:$0xff]  ;;  %v863_v6 = vld [vmem:[%s259_s5 + $0x10] sm:$0xff]  ;;  %v862_v9 = vld [vmem:[%s259_s5 + $0x8] sm:$0xff]  ;;  %s1214_s15 = smov (!%p276_p5, %s924_s15), 1 }
  0x10   : > { %291 = vst.msk [vmem:[#allocation2 + $0x18] sm:$0xff] %vm287_vm0, %v934_v2  ;;  %v865_v7 = vld [vmem:[%s259_s5 + $0x20] sm:$0xff]  ;;  %v867_v8 = vld [vmem:[%s259_s5 + $0x30] sm:$0xff]  ;;  %v864_v10 = vld [vmem:[%s259_s5 + $0x18] sm:$0xff]  ;;  %s1119_s12 = scalar_lea.vmem %s1205_s3, %s1214_s15  ;;  %s1132_s19 = scalar_lea.vmem %s1206_s4, %s1214_s15 }
  0x11   : > { %438 = vmatpush.bf16.msra.mxu0 %v871_v1  ;;  %876 = vmatpush.bf16.msra.mxu1 %v871_v1  ;;  %292 = vst.msk [vmem:[#allocation2 + $0x20] sm:$0xff] %vm287_vm0, %v934_v2  ;;  %v866_v11 = vld [vmem:[%s259_s5 + $0x28] sm:$0xff]  ;;  %v868_v12 = vld [vmem:[%s259_s5 + $0x38] sm:$0xff] }
  0x12   : > { %877 = vmatpush.bf16.msra.mxu2 %v871_v1  ;;  %878 = vmatpush.bf16.msra.mxu3 %v871_v1  ;;  %293 = vst.msk [vmem:[#allocation2 + $0x28] sm:$0xff] %vm287_vm0, %v934_v2 }
  0x13   : > { %294 = vst.msk [vmem:[#allocation2 + $0x30] sm:$0xff] %vm287_vm0, %v934_v2 }
  0x14   : > { %295 = vst.msk [vmem:[#allocation2 + $0x38] sm:$0xff] %vm287_vm0, %v934_v2  ;;  %v304_v13 = vld [vmem:[#allocation2] sm:$0xff] }
  0x15   : > { %439 = vmatpush.bf16.msra.mxu0 %v870_v3  ;;  %879 = vmatpush.bf16.msra.mxu1 %v870_v3  ;;  %296 = vst.msk [vmem:[#allocation2 + $0x40] sm:$0xff] %vm287_vm0, %v934_v2  ;;  %v305_v20 = vld [vmem:[#allocation2 + $0x8] sm:$0xff] }
  0x16   : > { %880 = vmatpush.bf16.msra.mxu2 %v870_v3  ;;  %881 = vmatpush.bf16.msra.mxu3 %v870_v3  ;;  %297 = vst.msk [vmem:[#allocation2 + $0x48] sm:$0xff] %vm287_vm0, %v934_v2  ;;  %v306_v33 = vld [vmem:[#allocation2 + $0x10] sm:$0xff] }
  0x17   : > { %298 = vst.msk [vmem:[#allocation2 + $0x50] sm:$0xff] %vm287_vm0, %v934_v2  ;;  %v307_v50 = vld [vmem:[#allocation2 + $0x18] sm:$0xff] }
  0x18   : > { %299 = vst.msk [vmem:[#allocation2 + $0x58] sm:$0xff] %vm287_vm0, %v934_v2  ;;  %v308_v14 = vld [vmem:[#allocation2 + $0x20] sm:$0xff] }
  0x19   : > { %440 = vmatpush.bf16.msra.mxu0 %v869_v4  ;;  %882 = vmatpush.bf16.msra.mxu1 %v869_v4  ;;  %300 = vst.msk [vmem:[#allocation2 + $0x60] sm:$0xff] %vm287_vm0, %v934_v2  ;;  %v309_v21 = vld [vmem:[#allocation2 + $0x28] sm:$0xff] }
  0x1a   : > { %883 = vmatpush.bf16.msra.mxu2 %v869_v4  ;;  %884 = vmatpush.bf16.msra.mxu3 %v869_v4  ;;  %301 = vst.msk [vmem:[#allocation2 + $0x68] sm:$0xff] %vm287_vm0, %v934_v2  ;;  %v310_v34 = vld [vmem:[#allocation2 + $0x30] sm:$0xff] }
  0x1b   : > { %302 = vst.msk [vmem:[#allocation2 + $0x70] sm:$0xff] %vm287_vm0, %v934_v2  ;;  %v311_v51 = vld [vmem:[#allocation2 + $0x38] sm:$0xff] }
  0x1c   : > { %851 = vmatmul.msk.bf16.vlgmr.msra.gmra.mxu0 %vm408_vm1, %v861_v5  ;;  %853 = vmatmul.msk.bf16.vlgmr.msra.gmra.mxu1 %vm408_vm1, %v863_v6  ;;  %303 = vst.msk [vmem:[#allocation2 + $0x78] sm:$0xff] %vm287_vm0, %v934_v2  ;;  %v312_v19 = vld [vmem:[#allocation2 + $0x40] sm:$0xff] }
  0x1d   : > { %855 = vmatmul.msk.bf16.vlgmr.msra.gmra.mxu2 %vm408_vm1, %v865_v7  ;;  %857 = vmatmul.msk.bf16.vlgmr.msra.gmra.mxu3 %vm408_vm1, %v867_v8  ;;  %v313_v39 = vld [vmem:[#allocation2 + $0x48] sm:$0xff]  ;;  %555 = vst.msk [vmem:[%s1119_s12] sm:$0x1] %vm554_vm2, %v934_v2 }
  0x1e   : > { %v314_v47 = vld [vmem:[#allocation2 + $0x50] sm:$0xff]  ;;  %556 = vst.msk [vmem:[%s1132_s19] sm:$0x1] %vm554_vm2, %v934_v2 }
  0x1f   : > { %v315_v0 = vld [vmem:[#allocation2 + $0x58] sm:$0xff] }
  0x20   : > { %v316_v27 = vld [vmem:[#allocation2 + $0x60] sm:$0xff] }
  0x21   : > { %v317_v43 = vld [vmem:[#allocation2 + $0x68] sm:$0xff] }
  0x22   : > { %v318_v58 = vld [vmem:[#allocation2 + $0x70] sm:$0xff] }
  0x23   : > { %v319_v1 = vld [vmem:[#allocation2 + $0x78] sm:$0xff] }
  0x2c   : > { %852 = vmatmul.msk.bf16.gmra.mxu0 %vm408_vm1, %v862_v9  ;;  %854 = vmatmul.msk.bf16.gmra.mxu1 %vm408_vm1, %v864_v10 }
  0x2d   : > { %856 = vmatmul.msk.bf16.gmra.mxu2 %vm408_vm1, %v866_v11  ;;  %858 = vmatmul.msk.bf16.gmra.mxu3 %vm408_vm1, %v868_v12 }
  0x99   : > { %v442_v15 = vpop.f32.mrf.mxu0  ;;  %v452_v16 = vpop.f32.mrf.mxu1 }
  0x9a   : > { %v482_v17 = vadd.f32 %v442_v15, %v304_v13  ;;  %v486_v18 = vadd.f32 %v452_v16, %v308_v14 }
  0x9c   : > { %499 = vst.msk [vmem:[#allocation2] sm:$0xff] %vm287_vm0, %v482_v17 }
  0x9d   : > { %503 = vst.msk [vmem:[#allocation2 + $0x20] sm:$0xff] %vm287_vm0, %v486_v18 }
  0xa0   : > { %v462_v22 = vpop.f32.mrf.mxu2  ;;  %v472_v23 = vpop.f32.mrf.mxu3 }
  0xa1   : > { %v444_v24 = vpop.f32.mrf.mxu0  ;;  %v454_v25 = vpop.f32.mrf.mxu1  ;;  %v490_v26 = vadd.f32 %v462_v22, %v312_v19  ;;  %v494_v32 = vadd.f32 %v472_v23, %v316_v27 }
  0xa2   : > { %v483_v28 = vadd.f32 %v444_v24, %v305_v20  ;;  %v487_v30 = vadd.f32 %v454_v25, %v309_v21 }
  0xa3   : > { %v1047_v29 = vld [vmem:[#allocation2] sm:$0xff]  ;;  %507 = vst.msk [vmem:[#allocation2 + $0x40] sm:$0xff] %vm287_vm0, %v490_v26 }
  0xa4   : > { %534 = vst.msk [vmem:[%s1045_s9] sm:$0xff] %vm287_vm0, %v1047_v29  ;;  %v1053_v31 = vld [vmem:[#allocation2 + $0x20] sm:$0xff]  ;;  %v599_v4 = vmul.f32 %v1047_v29, %v1047_v29  ;;  %v558_v12 = vsel %vm287_vm0, %v1047_v29, 0.0 }
  0xa5   : > { %538 = vst.msk [vmem:[%s1045_s9 + $0x20] sm:$0xff] %vm287_vm0, %v1053_v31  ;;  %v603_v22 = vmul.f32 %v1053_v31, %v1053_v31 }
  0xa6   : > { %500 = vst.msk [vmem:[#allocation2 + $0x8] sm:$0xff] %vm287_vm0, %v483_v28  ;;  %v615_v17 = vsel %vm287_vm0, %v599_v4, 0.0  ;;  %v565_v28 = vsel %vm287_vm0, %v1053_v31, 0.0 }
  0xa7   : > { %504 = vst.msk [vmem:[#allocation2 + $0x28] sm:$0xff] %vm287_vm0, %v487_v30 }
  0xa8   : > { %v464_v35 = vpop.f32.mrf.mxu2  ;;  %511 = vst.msk [vmem:[#allocation2 + $0x60] sm:$0xff] %vm287_vm0, %v494_v32  ;;  %v474_v36 = vpop.f32.mrf.mxu3 }
  0xa9   : > { %v447_v37 = vpop.f32.mrf.mxu0  ;;  %v457_v38 = vpop.f32.mrf.mxu1  ;;  %v491_v44 = vadd.f32 %v464_v35, %v313_v39  ;;  %v495_v48 = vadd.f32 %v474_v36, %v317_v43  ;;  %v622_v35 = vsel %vm287_vm0, %v603_v22, 0.0 }
  0xaa   : > { %v1061_v40 = vld [vmem:[#allocation2 + $0x40] sm:$0xff]  ;;  %v484_v41 = vadd.f32 %v447_v37, %v306_v33  ;;  %v488_v42 = vadd.f32 %v457_v38, %v310_v34 }
  0xab   : > { %542 = vst.msk [vmem:[%s1045_s9 + $0x40] sm:$0xff] %vm287_vm0, %v1061_v40 }
  0xac   : > { %501 = vst.msk [vmem:[#allocation2 + $0x10] sm:$0xff] %vm287_vm0, %v484_v41 }
  0xad   : > { %v519_v45 = vld [vmem:[#allocation2 + $0x8] sm:$0xff]  ;;  %505 = vst.msk [vmem:[#allocation2 + $0x30] sm:$0xff] %vm287_vm0, %v488_v42 }
  0xae   : > { %535 = vst.msk [vmem:[%s1045_s9 + $0x8] sm:$0xff] %vm287_vm0, %v519_v45  ;;  %v1070_v46 = vld [vmem:[#allocation2 + $0x28] sm:$0xff]  ;;  %v600_v63 = vmul.f32 %v519_v45, %v519_v45  ;;  %v559_v5 = vsel %vm287_vm0, %v519_v45, 0.0 }
  0xaf   : > { %539 = vst.msk [vmem:[%s1045_s9 + $0x28] sm:$0xff] %vm287_vm0, %v1070_v46  ;;  %v1075_v49 = vld [vmem:[#allocation2 + $0x60] sm:$0xff]  ;;  %v560_v16 = vadd.f32 %v559_v5, %v558_v12  ;;  %v604_v29 = vmul.f32 %v1070_v46, %v1070_v46  ;;  %v567_v31 = vsel %vm287_vm0, %v1070_v46, 0.0  ;;  %v607_v46 = vmul.f32 %v1061_v40, %v1061_v40 }
  0xb0   : > { %508 = vst.msk [vmem:[#allocation2 + $0x48] sm:$0xff] %vm287_vm0, %v491_v44  ;;  %v467_v52 = vpop.f32.mrf.mxu2  ;;  %v477_v53 = vpop.f32.mrf.mxu3  ;;  %v616_v13 = vsel %vm287_vm0, %v600_v63, 0.0  ;;  %v611_v4 = vmul.f32 %v1075_v49, %v1075_v49 }
  0xb1   : > { %546 = vst.msk [vmem:[%s1045_s9 + $0x60] sm:$0xff] %vm287_vm0, %v1075_v49  ;;  %v449_v54 = vpop.f32.mrf.mxu0  ;;  %v459_v55 = vpop.f32.mrf.mxu1  ;;  %v492_v56 = vadd.f32 %v467_v52, %v314_v47  ;;  %v496_v62 = vadd.f32 %v477_v53, %v318_v58  ;;  %v617_v19 = vadd.f32 %v616_v13, %v615_v17  ;;  %v624_v41 = vsel %vm287_vm0, %v604_v29, 0.0 }
  0xb2   : > { %v485_v57 = vadd.f32 %v449_v54, %v307_v50  ;;  %512 = vst.msk [vmem:[#allocation2 + $0x68] sm:$0xff] %vm287_vm0, %v495_v48  ;;  %v489_v60 = vadd.f32 %v459_v55, %v311_v51  ;;  %v573_v52 = vsel %vm287_vm0, %v1061_v40, 0.0 }
  0xb3   : > { %v520_v59 = vld [vmem:[#allocation2 + $0x10] sm:$0xff]  ;;  %509 = vst.msk [vmem:[#allocation2 + $0x50] sm:$0xff] %vm287_vm0, %v492_v56 }
  0xb4   : > { %536 = vst.msk [vmem:[%s1045_s9 + $0x10] sm:$0xff] %vm287_vm0, %v520_v59  ;;  %v524_v61 = vld [vmem:[#allocation2 + $0x30] sm:$0xff]  ;;  %v601_v6 = vmul.f32 %v520_v59, %v520_v59  ;;  %v561_v14 = vsel %vm287_vm0, %v520_v59, 0.0 }
  0xb5   : > { %540 = vst.msk [vmem:[%s1045_s9 + $0x30] sm:$0xff] %vm287_vm0, %v524_v61  ;;  %v562_v20 = vadd.f32 %v561_v14, %v560_v16  ;;  %v605_v36 = vmul.f32 %v524_v61, %v524_v61  ;;  %v569_v42 = vsel %vm287_vm0, %v524_v61, 0.0  ;;  %v638_v14 = vsel %vm287_vm0, %v611_v4, 0.0 }
  0xb6   : > { %502 = vst.msk [vmem:[#allocation2 + $0x18] sm:$0xff] %vm287_vm0, %v485_v57  ;;  %v618_v18 = vsel %vm287_vm0, %v601_v6, 0.0  ;;  %v630_v57 = vsel %vm287_vm0, %v607_v46, 0.0 }
  0xb7   : > { %v1089_v3 = vld [vmem:[#allocation2 + $0x48] sm:$0xff]  ;;  %506 = vst.msk [vmem:[#allocation2 + $0x38] sm:$0xff] %vm287_vm0, %v489_v60  ;;  %v619_v26 = vadd.f32 %v618_v18, %v617_v19  ;;  %v626_v2 = vsel %vm287_vm0, %v605_v36, 0.0 }
  0xb8   : > { %543 = vst.msk [vmem:[%s1045_s9 + $0x48] sm:$0xff] %vm287_vm0, %v1089_v3  ;;  %v469_v7 = vpop.f32.mrf.mxu2  ;;  %v479_v8 = vpop.f32.mrf.mxu3  ;;  %v608_v53 = vmul.f32 %v1089_v3, %v1089_v3  ;;  %v575_v58 = vsel %vm287_vm0, %v1089_v3, 0.0  ;;  %v581_v3 = vsel %vm287_vm0, %v1075_v49, 0.0 }
  0xb9   : > { %v1098_v9 = vld [vmem:[#allocation2 + $0x68] sm:$0xff]  ;;  %v493_v10 = vadd.f32 %v469_v7, %v315_v0  ;;  %513 = vst.msk [vmem:[#allocation2 + $0x70] sm:$0xff] %vm287_vm0, %v496_v62  ;;  %v497_v11 = vadd.f32 %v479_v8, %v319_v1 }
  0xba   : > { %v528_v15 = vld [vmem:[#allocation2 + $0x50] sm:$0xff]  ;;  %547 = vst.msk [vmem:[%s1045_s9 + $0x68] sm:$0xff] %vm287_vm0, %v1098_v9  ;;  %v632_v62 = vsel %vm287_vm0, %v608_v53, 0.0 }
  0xbb   : > { %544 = vst.msk [vmem:[%s1045_s9 + $0x50] sm:$0xff] %vm287_vm0, %v528_v15  ;;  %v609_v59 = vmul.f32 %v528_v15, %v528_v15  ;;  %v577_v63 = vsel %vm287_vm0, %v528_v15, 0.0  ;;  %v583_v15 = vsel %vm287_vm0, %v1098_v9, 0.0 }
  0xbc   : > { %510 = vst.msk [vmem:[#allocation2 + $0x58] sm:$0xff] %vm287_vm0, %v493_v10  ;;  %v612_v10 = vmul.f32 %v1098_v9, %v1098_v9 }
  0xbd   : > { %v521_v21 = vld [vmem:[#allocation2 + $0x18] sm:$0xff]  ;;  %514 = vst.msk [vmem:[#allocation2 + $0x78] sm:$0xff] %vm287_vm0, %v497_v11  ;;  %v634_v5 = vsel %vm287_vm0, %v609_v59, 0.0 }
  0xbe   : > { %537 = vst.msk [vmem:[%s1045_s9 + $0x18] sm:$0xff] %vm287_vm0, %v521_v21  ;;  %v563_v23 = vsel %vm287_vm0, %v521_v21, 0.0  ;;  %v602_v24 = vmul.f32 %v521_v21, %v521_v21  ;;  %v525_v25 = vld [vmem:[#allocation2 + $0x38] sm:$0xff]  ;;  %v640_v19 = vsel %vm287_vm0, %v612_v10, 0.0 }
  0xbf   : > { %v564_v27 = vadd.f32 %v563_v23, %v562_v20  ;;  %541 = vst.msk [vmem:[%s1045_s9 + $0x38] sm:$0xff] %vm287_vm0, %v525_v25  ;;  %v606_v43 = vmul.f32 %v525_v25, %v525_v25  ;;  %v571_v48 = vsel %vm287_vm0, %v525_v25, 0.0 }
  0xc0   : > { %v620_v30 = vsel %vm287_vm0, %v602_v24, 0.0  ;;  %v532_v32 = vld [vmem:[#allocation2 + $0x70] sm:$0xff] }
  0xc1   : > { %v566_v33 = vadd.f32 %v565_v28, %v564_v27  ;;  %v621_v34 = vadd.f32 %v620_v30, %v619_v26  ;;  %548 = vst.msk [vmem:[%s1045_s9 + $0x70] sm:$0xff] %vm287_vm0, %v532_v32  ;;  %v628_v54 = vsel %vm287_vm0, %v606_v43, 0.0  ;;  %v613_v16 = vmul.f32 %v532_v32, %v532_v32 }
  0xc2   : > { %v585_v20 = vsel %vm287_vm0, %v532_v32, 0.0 }
  0xc3   : > { %v623_v37 = vadd.f32 %v622_v35, %v621_v34  ;;  %v568_v38 = vadd.f32 %v567_v31, %v566_v33  ;;  %v529_v39 = vld [vmem:[#allocation2 + $0x58] sm:$0xff]  ;;  %v642_v23 = vsel %vm287_vm0, %v613_v16, 0.0 }
  0xc4   : > { %545 = vst.msk [vmem:[%s1045_s9 + $0x58] sm:$0xff] %vm287_vm0, %v529_v39  ;;  %v533_v44 = vld [vmem:[#allocation2 + $0x78] sm:$0xff]  ;;  %v610_v40 = vmul.f32 %v529_v39, %v529_v39  ;;  %v579_v6 = vsel %vm287_vm0, %v529_v39, 0.0 }
  0xc5   : > { %v570_v45 = vadd.f32 %v569_v42, %v568_v38  ;;  %v625_v47 = vadd.f32 %v624_v41, %v623_v37  ;;  %549 = vst.msk [vmem:[%s1045_s9 + $0x78] sm:$0xff] %vm287_vm0, %v533_v44  ;;  %v614_v49 = vmul.f32 %v533_v44, %v533_v44  ;;  %v587_v24 = vsel %vm287_vm0, %v533_v44, 0.0  ;;  %v557_v37 = vld [vmem:[%s1119_s12] sm:$0x1] }
  0xc6   : > { %v636_v11 = vsel %vm287_vm0, %v610_v40, 0.0  ;;  %v598_v41 = vld [vmem:[%s1132_s19] sm:$0x1] }
  0xc7   : > { %v572_v50 = vadd.f32 %v571_v48, %v570_v45  ;;  %v627_v51 = vadd.f32 %v626_v2, %v625_v47  ;;  %v644_v9 = vsel %vm287_vm0, %v614_v49, 0.0 }
  0xc9   : > { %v574_v55 = vadd.f32 %v573_v52, %v572_v50  ;;  %v629_v56 = vadd.f32 %v628_v54, %v627_v51 }
  0xcb   : > { %v631_v60 = vadd.f32 %v630_v57, %v629_v56  ;;  %v576_v61 = vadd.f32 %v575_v58, %v574_v55 }
  0xcd   : > { %v578_v0 = vadd.f32 %v577_v63, %v576_v61  ;;  %v633_v1 = vadd.f32 %v632_v62, %v631_v60 }
  0xcf   : > { %v635_v7 = vadd.f32 %v634_v5, %v633_v1  ;;  %v580_v8 = vadd.f32 %v579_v6, %v578_v0 }
  0xd1   : > { %v582_v12 = vadd.f32 %v581_v3, %v580_v8  ;;  %v637_v13 = vadd.f32 %v636_v11, %v635_v7 }
  0xd3   : > { %v639_v17 = vadd.f32 %v638_v14, %v637_v13  ;;  %v584_v18 = vadd.f32 %v583_v15, %v582_v12 }
  0xd5   : > { %v586_v21 = vadd.f32 %v585_v20, %v584_v18  ;;  %v641_v22 = vadd.f32 %v640_v19, %v639_v17 }
  0xd7   : > { %v643_v25 = vadd.f32 %v642_v23, %v641_v22  ;;  %v588_v26 = vadd.f32 %v587_v24, %v586_v21 }
  0xd9   : > { %v589_v27 = vrot.slane %v588_v26, 4  ;;  %v645_v28 = vadd.f32 %v644_v9, %v643_v25 }
  0xdb   : > { %v590_v29 = vadd.f32 %v589_v27, %v588_v26  ;;  %v646_v30 = vrot.slane %v645_v28, 4 }
  0xdd   : > { %v591_v32 = vrot.slane %v590_v29, 2  ;;  %v647_v33 = vadd.f32 %v646_v30, %v645_v28 }
  0xdf   : > { %v592_v34 = vadd.f32 %v591_v32, %v590_v29  ;;  %v648_v35 = vrot.slane %v647_v33, 2 }
  0xe1   : > { %v593_v31 = vrot.slane %v592_v34, 1  ;;  %v649_v36 = vadd.f32 %v648_v35, %v647_v33 }
  0xe3   : > { %v594_v38 = vadd.f32 %v593_v31, %v592_v34  ;;  %v650_v39 = vrot.slane %v649_v36, 1 }
  0xe5   : > { %v595_v42 = vadd.f32 %v594_v38, %v557_v37  ;;  %v651_v43 = vadd.f32 %v650_v39, %v649_v36 }
  0xe7   : > { %597 = vst.msk [vmem:[%s1119_s12] sm:$0x1] %vm554_vm2, %v595_v42  ;;  %v652_v44 = vadd.f32 %v651_v43, %v598_v41 }
  0xe9   : > { %653 = vst.msk [vmem:[%s1132_s19] sm:$0x1] %vm554_vm2, %v652_v44 }
  0xea PF: > { %s15_s17 = sadd.s32 1, %s932_s17   ;;  %s1207_s15 = smov %s928_s16 }
  0xeb   : > { %p12_p6 = scmp.ge.s32.totalorder %s15_s17, 4   ;;  %s1208_s16 = smov %s1210_s18 }
  0xed   :  { %14 = sbr.rel (!%p12_p6) target bundleno = 2 (0x2), region = 97 }

</bundles_post_ra>
